<compile_context>
chip_gen: v6e
topology: v6e:2x2x1
jax: 0.10.0
libtpu: 0.0.40
codegen_flags: <defaults>
</compile_context>

<pallas_src>
import jax
import jax.numpy as jnp
from jax import lax
from jax.experimental import pallas as pl
from jax.experimental.pallas import tpu as pltpu


# ----------------------------------------------------------------------------
# helpers
# ----------------------------------------------------------------------------
def _vmem_capacity_bytes():
    try:
        return int(pltpu.get_tpu_info().vmem_capacity_bytes)
    except Exception:
        return 64 << 20  # conservative default (v7x per-core VMEM)


def _round_up(x, m):
    return ((x + m - 1) // m) * m


def _pick_row_tile(NR, max_rows=512):
    """Row tile: NR itself, or a divisor of NR that is a multiple of 8."""
    if NR <= max_rows or NR % 8 != 0:
        return NR
    start = max_rows - (max_rows % 8)
    for cand in range(start, 7, -8):
        if NR % cand == 0:
            return cand
    return NR


def _pick_spatial_tile(S_pad, r_tile, target_bytes=1 << 20, min_steps=8):
    """Largest multiple of 128 dividing S_pad s.t. the f32 block is ~target_bytes
    and (when possible) there are at least `min_steps` spatial grid steps."""
    bytes_cap = max(128, (target_bytes // max(1, r_tile * 4)) // 128 * 128)
    steps_cap = max(128, (S_pad // min_steps) // 128 * 128)
    cap = min(S_pad, bytes_cap, steps_cap)
    cap = max(128, (cap // 128) * 128)
    for cand in range(cap, 127, -128):
        if S_pad % cand == 0:
            return cand
    return 128


# ----------------------------------------------------------------------------
# Fused single-pass kernel: one sample (C, S_pad) resident in VMEM.
# ----------------------------------------------------------------------------
def _make_fused_kernel(S, S_pad, eps):
    inv_S = 1.0 / float(S)
    padded = (S_pad != S)

    def kernel(x_ref, w1g_ref, b1g_ref, w2g_ref, b2g_ref,
               w1b_ref, b1b_ref, w2b_ref, b2b_ref, o_ref):
        x = x_ref[0].astype(jnp.float32)                      # (C, S_pad)

        # per-channel spatial mean (zero padding contributes 0 to the sum)
        mean = jnp.sum(x, axis=-1, keepdims=True) * inv_S     # (C, 1)
        xc = x - mean

        # mean-centered biased variance (no catastrophic cancellation)
        if padded:
            valid = lax.broadcasted_iota(jnp.int32, x.shape, 1) < S
            xc_sq = jnp.where(valid, xc * xc, 0.0)
        else:
            xc_sq = xc * xc
        var = jnp.sum(xc_sq, axis=-1, keepdims=True) * inv_S  # (C, 1)
        inv_std = lax.rsqrt(var + eps)                        # (C, 1)

        # SE MLP on the channel-mean vector -- tiny, VPU/XLU only (no MXU),
        # weights pre-transposed so no in-kernel transposes are needed.
        def se_branch(w1t_ref, b1_ref, w2_ref, b2_ref):
            # h_j = relu(sum_c mean_c * w1t[c, j] + b1_j)      -> (1, Cm)
            h = jnp.sum(mean * w1t_ref[...], axis=0, keepdims=True) + b1_ref[...]
            h = jnp.maximum(h, 0.0)
            # o_c = sum_j h_j * w2[c, j] + b2_c                -> (C, 1)
            return jnp.sum(h * w2_ref[...], axis=-1, keepdims=True) + b2_ref[...]

        g_pre = se_branch(w1g_ref, b1g_ref, w2g_ref, b2g_ref)
        b_pre = se_branch(w1b_ref, b1b_ref, w2b_ref, b2b_ref)
        gamma = 1.0 / (1.0 + jnp.exp(-g_pre))                 # sigmoid (EUP)
        beta = jnp.tanh(b_pre)

        o_ref[0] = (gamma * (xc * inv_std) + beta).astype(o_ref.dtype)

    return kernel


# ----------------------------------------------------------------------------
# Two-pass fallback kernels.
# ----------------------------------------------------------------------------
def _stats_kernel(x_ref, sum_ref, ssq_ref):
    """Accumulate per-row sum / sum-of-squares.  Grid = (rows, spatial);
    output block index is constant along the (last, "arbitrary") spatial axis."""
    x = x_ref[...].astype(jnp.float32)                        # (r_tile, s_tile)
    ps = jnp.sum(x, axis=-1, keepdims=True)
    pq = jnp.sum(x * x, axis=-1, keepdims=True)

    @pl.when(pl.program_id(1) == 0)
    def _():
        sum_ref[...] = ps
        ssq_ref[...] = pq

    @pl.when(pl.program_id(1) > 0)
    def _():
        sum_ref[...] = sum_ref[...] + ps
        ssq_ref[...] = ssq_ref[...] + pq


def _apply_kernel(x_ref, scale_ref, shift_ref, o_ref):
    x = x_ref[...].astype(jnp.float32)                        # (r_tile, s_tile)
    o_ref[...] = (x * scale_ref[...] + shift_ref[...]).astype(o_ref.dtype)


# ----------------------------------------------------------------------------
# Forward
# ----------------------------------------------------------------------------
def fast_smooth_se_norm_forward(x_ncdhw,
                                w1_g, b1_g, w2_g, b2_g,
                                w1_b, b1_b, w2_b, b2_b,
                                eps=1e-5,
                                force_two_pass=False,
                                donate_input=False):
    """FastSmoothSENorm forward.

    x_ncdhw : (N, C, D, H, W)
    w1_* : (C//r, C), b1_* : (C//r,)   (1x1x1 Conv3d == linear on channel dim)
    w2_* : (C, C//r), b2_* : (C,)
    """
    N, C, D, H, W = x_ncdhw.shape
    S = D * H * W
    NR = N * C
    S_pad = _round_up(S, 128)
    padded = (S_pad != S)
    f32 = jnp.float32

    x2d = x_ncdhw.reshape(NR, S)
    if padded:
        # keep lane dim a multiple of 128 -> unmasked vector stores, pipelined grid
        x2d = jnp.pad(x2d, ((0, 0), (0, S_pad - S)))

    vmem_cap = _vmem_capacity_bytes()
    vmem_limit = int(vmem_cap * 3 // 4)        # generation-aware scoped-VMEM limit
    itemsize = x_ncdhw.dtype.itemsize

    # fused-path footprint: 2x double-buffered input + 2x double-buffered output
    # + ~3 f32 temporaries of one sample.
    per_sample_in = C * S_pad * itemsize
    per_sample_f32 = C * S_pad * 4
    fused_footprint = 4 * per_sample_in + 3 * per_sample_f32
    use_fused = (not force_two_pass) and (fused_footprint <= vmem_limit)

    io_alias = {0: 0} if donate_input else {}

    if use_fused:
        # ---------------- single-pass fused path: read x once, write once ----
        x3d = x2d.reshape(N, C, S_pad)
        Cm = w1_g.shape[0]
        w1gT = w1_g.T.astype(f32)                  # (C, Cm)
        b1g = b1_g.reshape(1, Cm).astype(f32)
        w2g = w2_g.astype(f32)                     # (C, Cm)
        b2g = b2_g.reshape(C, 1).astype(f32)
        w1bT = w1_b.T.astype(f32)
        b1b = b1_b.reshape(1, Cm).astype(f32)
        w2b = w2_b.astype(f32)
        b2b = b2_b.reshape(C, 1).astype(f32)

        def small(shp):
            return pl.BlockSpec(shp, lambda n: (0, 0))

        out3d = pl.pallas_call(
            _make_fused_kernel(S, S_pad, eps),
            out_shape=jax.ShapeDtypeStruct((N, C, S_pad), x_ncdhw.dtype),
            grid_spec=pltpu.PrefetchScalarGridSpec(
                num_scalar_prefetch=0,
                grid=(N,),
                in_specs=[pl.BlockSpec((1, C, S_pad), lambda n: (n, 0, 0)),
                          small((C, Cm)), small((1, Cm)),
                          small((C, Cm)), small((C, 1)),
                          small((C, Cm)), small((1, Cm)),
                          small((C, Cm)), small((C, 1))],
                out_specs=pl.BlockSpec((1, C, S_pad), lambda n: (n, 0, 0))),
            compiler_params=pltpu.CompilerParams(
                dimension_semantics=("parallel",),   # v7x megacore splits samples
                vmem_limit_bytes=vmem_limit),
            cost_estimate=pl.CostEstimate(
                flops=8 * NR * S_pad,
                transcendentals=3 * NR,
                bytes_accessed=2 * NR * S_pad * itemsize),
            input_output_aliases=io_alias,
        )(x3d, w1gT, b1g, w2g, b2g, w1bT, b1b, w2b, b2b)
        out2d = out3d.reshape(NR, S_pad)

    else:
        # ---------------- two-pass fallback (sample does not fit VMEM) -------
        r_tile = _pick_row_tile(NR)
        s_tile = _pick_spatial_tile(S_pad, r_tile)
        num_r = NR // r_tile
        num_s = S_pad // s_tile

        sums, ssqs = pl.pallas_call(
            _stats_kernel,
            out_shape=(jax.ShapeDtypeStruct((NR, 1), f32),
                       jax.ShapeDtypeStruct((NR, 1), f32)),
            grid_spec=pltpu.PrefetchScalarGridSpec(
                num_scalar_prefetch=0,
                grid=(num_r, num_s),                 # reduction (spatial) axis last
                in_specs=[pl.BlockSpec((r_tile, s_tile), lambda r, s: (r, s))],
                out_specs=(pl.BlockSpec((r_tile, 1), lambda r, s: (r, 0)),
                           pl.BlockSpec((r_tile, 1), lambda r, s: (r, 0)))),
            compiler_params=pltpu.CompilerParams(
                dimension_semantics=("parallel", "arbitrary"),
                vmem_limit_bytes=vmem_limit),
            cost_estimate=pl.CostEstimate(
                flops=3 * NR * S_pad,
                transcendentals=0,
                bytes_accessed=NR * S_pad * itemsize),
        )(x2d)

        inv_S = 1.0 / float(S)
        mean = (sums[:, 0] * inv_S).reshape(N, C)
        # TODO(synk): E[x^2]-E[x]^2 can lose precision when |mean| >> std; the fused
        # path (used whenever a sample fits VMEM) computes mean-centered variance.
        var = jnp.maximum(ssqs[:, 0].reshape(N, C) * inv_S - mean * mean, 0.0)
        inv_std = lax.rsqrt(var + eps)

        def se_branch(m, w1, b1, w2, b2):            # tiny O(N*C^2) glue
            h = jnp.maximum(jnp.dot(m, w1.T) + b1, 0.0)
            return jnp.dot(h, w2.T) + b2

        gamma = jax.nn.sigmoid(se_branch(mean, w1_g, b1_g, w2_g, b2_g))
        beta = jnp.tanh(se_branch(mean, w1_b, b1_b, w2_b, b2_b))
        scale = (gamma * inv_std).reshape(NR, 1).astype(f32)
        shift = (beta - gamma * mean * inv_std).reshape(NR, 1).astype(f32)

        out2d = pl.pallas_call(
            _apply_kernel,
            out_shape=jax.ShapeDtypeStruct((NR, S_pad), x_ncdhw.dtype),
            grid_spec=pltpu.PrefetchScalarGridSpec(
                num_scalar_prefetch=0,
                grid=(num_r, num_s),
                in_specs=[pl.BlockSpec((r_tile, s_tile), lambda r, s: (r, s)),
                          pl.BlockSpec((r_tile, 1), lambda r, s: (r, 0)),
                          pl.BlockSpec((r_tile, 1), lambda r, s: (r, 0))],
                out_specs=pl.BlockSpec((r_tile, s_tile), lambda r, s: (r, s))),
            compiler_params=pltpu.CompilerParams(
                dimension_semantics=("parallel", "parallel"),
                vmem_limit_bytes=vmem_limit),
            cost_estimate=pl.CostEstimate(
                flops=2 * NR * S_pad,
                transcendentals=0,
                bytes_accessed=2 * NR * S_pad * itemsize),
            input_output_aliases=io_alias,
        )(x2d, scale, shift)

    if padded:
        out2d = out2d[:, :S]
    return out2d.reshape(N, C, D, H, W)


# ----------------------------------------------------------------------------
# Pure-JAX reference (same semantics as the PyTorch module).
# ----------------------------------------------------------------------------
def fast_smooth_se_norm_reference(x, w1_g, b1_g, w2_g, b2_g,
                                  w1_b, b1_b, w2_b, b2_b, eps=1e-5):
    N, C, D, H, W = x.shape
    mean = x.reshape(N, C, -1).mean(-1)                       # (N, C)

    def se_branch(m, w1, b1, w2, b2):
        h = jnp.maximum(jnp.dot(m, w1.T) + b1, 0.0)
        return jnp.dot(h, w2.T) + b2

    gamma = jax.nn.sigmoid(se_branch(mean, w1_g, b1_g, w2_g, b2_g))
    beta = jnp.tanh(se_branch(mean, w1_b, b1_b, w2_b, b2_b))

    m = mean.reshape(N, C, 1, 1, 1)
    v = x.reshape(N, C, -1).var(-1).reshape(N, C, 1, 1, 1)    # biased variance
    xn = (x - m) / jnp.sqrt(v + eps)
    return gamma.reshape(N, C, 1, 1, 1) * xn + beta.reshape(N, C, 1, 1, 1)


if __name__ == "__main__":
    # Small shapes consistent with the module: N=2, C=4, reduction=2, D=H=W=16.
    N, C, D, H, W = 2, 4, 16, 16, 16
    R = 2
    Cm = C // R

    key = jax.random.PRNGKey(0)
    ks = jax.random.split(key, 9)
    x = jax.random.normal(ks[0], (N, C, D, H, W), jnp.float32)

    w1_g = jax.random.normal(ks[1], (Cm, C), jnp.float32) * 0.5
    b1_g = jax.random.normal(ks[2], (Cm,), jnp.float32) * 0.1
    w2_g = jax.random.normal(ks[3], (C, Cm), jnp.float32) * 0.5
    b2_g = jax.random.normal(ks[4], (C,), jnp.float32) * 0.1
    w1_b = jax.random.normal(ks[5], (Cm, C), jnp.float32) * 0.5
    b1_b = jax.random.normal(ks[6], (Cm,), jnp.float32) * 0.1
    w2_b = jax.random.normal(ks[7], (C, Cm), jnp.float32) * 0.5
    b2_b = jax.random.normal(ks[8], (C,), jnp.float32) * 0.1

    params = (w1_g, b1_g, w2_g, b2_g, w1_b, b1_b, w2_b, b2_b)

    ref = fast_smooth_se_norm_reference(x, *params)

    # Primary path: single-pass fused kernel (auto-selected for this shape).
    out_fused = jax.block_until_ready(fast_smooth_se_norm_forward(x, *params))
    assert out_fused.shape == (N, C, D, H, W)
    assert jnp.allclose(out_fused, ref, atol=1e-3, rtol=1e-3)

    # Fallback path: two-pass tiled kernels (exercised explicitly for coverage).
    out_2p = jax.block_until_ready(
        fast_smooth_se_norm_forward(x, *params, force_two_pass=True))
    assert jnp.allclose(out_2p, ref, atol=1e-3, rtol=1e-3)

    print("KERNEL_OK")
</pallas_src>

<mosaic_0001>
module attributes {stable_mosaic.version = 11 : i64} {
  func.func @kernel(%arg0: i32, %arg1: memref<1x4x4096xf32, #tpu.memory_space<vmem>>, %arg2: memref<4x2xf32, #tpu.memory_space<vmem>>, %arg3: memref<1x2xf32, #tpu.memory_space<vmem>>, %arg4: memref<4x2xf32, #tpu.memory_space<vmem>>, %arg5: memref<4x1xf32, #tpu.memory_space<vmem>>, %arg6: memref<4x2xf32, #tpu.memory_space<vmem>>, %arg7: memref<1x2xf32, #tpu.memory_space<vmem>>, %arg8: memref<4x2xf32, #tpu.memory_space<vmem>>, %arg9: memref<4x1xf32, #tpu.memory_space<vmem>>, %arg10: memref<1x4x4096xf32, #tpu.memory_space<vmem>>) attributes {dimension_semantics = [#tpu.dimension_semantics<parallel>], iteration_bounds = array<i64: 2>, scalar_prefetch = 0 : i64, scratch_operands = 0 : i64, tpu.core_type = #tpu.core_type<tc>, window_params = [{transform_indices = @transform_0, window_bounds = array<i64: 1, 4, 4096>}, {pipeline_mode = #tpu.pipeline_mode<synchronous>, transform_indices = @transform_1, window_bounds = array<i64: 4, 2>}, {pipeline_mode = #tpu.pipeline_mode<synchronous>, transform_indices = @transform_2, window_bounds = array<i64: 1, 2>}, {pipeline_mode = #tpu.pipeline_mode<synchronous>, transform_indices = @transform_3, window_bounds = array<i64: 4, 2>}, {pipeline_mode = #tpu.pipeline_mode<synchronous>, transform_indices = @transform_4, window_bounds = array<i64: 4, 1>}, {pipeline_mode = #tpu.pipeline_mode<synchronous>, transform_indices = @transform_5, window_bounds = array<i64: 4, 2>}, {pipeline_mode = #tpu.pipeline_mode<synchronous>, transform_indices = @transform_6, window_bounds = array<i64: 1, 2>}, {pipeline_mode = #tpu.pipeline_mode<synchronous>, transform_indices = @transform_7, window_bounds = array<i64: 4, 2>}, {pipeline_mode = #tpu.pipeline_mode<synchronous>, transform_indices = @transform_8, window_bounds = array<i64: 4, 1>}, {transform_indices = @transform_9, window_bounds = array<i64: 1, 4, 4096>}]} {
    %c0 = arith.constant 0 : index
    %c0_0 = arith.constant 0 : index
    %c0_1 = arith.constant 0 : index
    %0 = vector.load %arg1[%c0, %c0_0, %c0_1] : memref<1x4x4096xf32, #tpu.memory_space<vmem>>, vector<1x4x4096xf32>
    %1 = vector.shape_cast %0 : vector<1x4x4096xf32> to vector<4x4096xf32>
    %cst = arith.constant dense<0.000000e+00> : vector<4xf32>
    %2 = vector.multi_reduction <add>, %1, %cst [1] : vector<4x4096xf32> to vector<4xf32>
    %3 = vector.shape_cast %2 : vector<4xf32> to vector<4x1xf32>
    %cst_2 = arith.constant 2.44140625E-4 : f32
    %4 = vector.broadcast %cst_2 : f32 to vector<4x1xf32>
    %5 = arith.mulf %3, %4 : vector<4x1xf32>
    %6 = vector.broadcast %5 : vector<4x1xf32> to vector<4x4096xf32>
    %7 = arith.subf %1, %6 : vector<4x4096xf32>
    %8 = arith.mulf %7, %7 : vector<4x4096xf32>
    %cst_3 = arith.constant dense<0.000000e+00> : vector<4xf32>
    %9 = vector.multi_reduction <add>, %8, %cst_3 [1] : vector<4x4096xf32> to vector<4xf32>
    %10 = vector.shape_cast %9 : vector<4xf32> to vector<4x1xf32>
    %cst_4 = arith.constant 2.44140625E-4 : f32
    %11 = vector.broadcast %cst_4 : f32 to vector<4x1xf32>
    %12 = arith.mulf %10, %11 : vector<4x1xf32>
    %cst_5 = arith.constant 9.99999974E-6 : f32
    %13 = vector.broadcast %cst_5 : f32 to vector<4x1xf32>
    %14 = arith.addf %12, %13 : vector<4x1xf32>
    %15 = math.rsqrt %14 : vector<4x1xf32>
    %c0_6 = arith.constant 0 : index
    %c0_7 = arith.constant 0 : index
    %16 = vector.load %arg2[%c0_6, %c0_7] : memref<4x2xf32, #tpu.memory_space<vmem>>, vector<4x2xf32>
    %17 = vector.broadcast %5 : vector<4x1xf32> to vector<4x2xf32>
    %18 = arith.mulf %17, %16 : vector<4x2xf32>
    %cst_8 = arith.constant dense<0.000000e+00> : vector<2xf32>
    %19 = vector.multi_reduction <add>, %18, %cst_8 [0] : vector<4x2xf32> to vector<2xf32>
    %20 = vector.shape_cast %19 : vector<2xf32> to vector<1x2xf32>
    %c0_9 = arith.constant 0 : index
    %c0_10 = arith.constant 0 : index
    %21 = vector.load %arg3[%c0_9, %c0_10] : memref<1x2xf32, #tpu.memory_space<vmem>>, vector<1x2xf32>
    %22 = arith.addf %20, %21 : vector<1x2xf32>
    %cst_11 = arith.constant 0.000000e+00 : f32
    %23 = vector.broadcast %cst_11 : f32 to vector<1x2xf32>
    %24 = arith.maximumf %22, %23 : vector<1x2xf32>
    %c0_12 = arith.constant 0 : index
    %c0_13 = arith.constant 0 : index
    %25 = vector.load %arg4[%c0_12, %c0_13] : memref<4x2xf32, #tpu.memory_space<vmem>>, vector<4x2xf32>
    %26 = vector.broadcast %24 : vector<1x2xf32> to vector<4x2xf32>
    %27 = arith.mulf %26, %25 : vector<4x2xf32>
    %cst_14 = arith.constant dense<0.000000e+00> : vector<4xf32>
    %28 = vector.multi_reduction <add>, %27, %cst_14 [1] : vector<4x2xf32> to vector<4xf32>
    %29 = vector.shape_cast %28 : vector<4xf32> to vector<4x1xf32>
    %c0_15 = arith.constant 0 : index
    %c0_16 = arith.constant 0 : index
    %30 = vector.load %arg5[%c0_15, %c0_16] : memref<4x1xf32, #tpu.memory_space<vmem>>, vector<4x1xf32>
    %31 = arith.addf %29, %30 : vector<4x1xf32>
    %c0_17 = arith.constant 0 : index
    %c0_18 = arith.constant 0 : index
    %32 = vector.load %arg6[%c0_17, %c0_18] : memref<4x2xf32, #tpu.memory_space<vmem>>, vector<4x2xf32>
    %33 = vector.broadcast %5 : vector<4x1xf32> to vector<4x2xf32>
    %34 = arith.mulf %33, %32 : vector<4x2xf32>
    %cst_19 = arith.constant dense<0.000000e+00> : vector<2xf32>
    %35 = vector.multi_reduction <add>, %34, %cst_19 [0] : vector<4x2xf32> to vector<2xf32>
    %36 = vector.shape_cast %35 : vector<2xf32> to vector<1x2xf32>
    %c0_20 = arith.constant 0 : index
    %c0_21 = arith.constant 0 : index
    %37 = vector.load %arg7[%c0_20, %c0_21] : memref<1x2xf32, #tpu.memory_space<vmem>>, vector<1x2xf32>
    %38 = arith.addf %36, %37 : vector<1x2xf32>
    %cst_22 = arith.constant 0.000000e+00 : f32
    %39 = vector.broadcast %cst_22 : f32 to vector<1x2xf32>
    %40 = arith.maximumf %38, %39 : vector<1x2xf32>
    %c0_23 = arith.constant 0 : index
    %c0_24 = arith.constant 0 : index
    %41 = vector.load %arg8[%c0_23, %c0_24] : memref<4x2xf32, #tpu.memory_space<vmem>>, vector<4x2xf32>
    %42 = vector.broadcast %40 : vector<1x2xf32> to vector<4x2xf32>
    %43 = arith.mulf %42, %41 : vector<4x2xf32>
    %cst_25 = arith.constant dense<0.000000e+00> : vector<4xf32>
    %44 = vector.multi_reduction <add>, %43, %cst_25 [1] : vector<4x2xf32> to vector<4xf32>
    %45 = vector.shape_cast %44 : vector<4xf32> to vector<4x1xf32>
    %c0_26 = arith.constant 0 : index
    %c0_27 = arith.constant 0 : index
    %46 = vector.load %arg9[%c0_26, %c0_27] : memref<4x1xf32, #tpu.memory_space<vmem>>, vector<4x1xf32>
    %47 = arith.addf %45, %46 : vector<4x1xf32>
    %cst_28 = arith.constant 0.000000e+00 : f32
    %48 = vector.broadcast %cst_28 : f32 to vector<4x1xf32>
    %49 = arith.subf %48, %31 : vector<4x1xf32>
    %50 = math.exp %49 : vector<4x1xf32>
    %cst_29 = arith.constant 1.000000e+00 : f32
    %51 = vector.broadcast %cst_29 : f32 to vector<4x1xf32>
    %52 = arith.addf %51, %50 : vector<4x1xf32>
    %cst_30 = arith.constant 1.000000e+00 : f32
    %53 = vector.broadcast %cst_30 : f32 to vector<4x1xf32>
    %54 = arith.divf %53, %52 : vector<4x1xf32>
    %55 = math.tanh %47 : vector<4x1xf32>
    %56 = vector.broadcast %15 : vector<4x1xf32> to vector<4x4096xf32>
    %57 = arith.mulf %7, %56 : vector<4x4096xf32>
    %58 = vector.broadcast %54 : vector<4x1xf32> to vector<4x4096xf32>
    %59 = arith.mulf %58, %57 : vector<4x4096xf32>
    %60 = vector.broadcast %55 : vector<4x1xf32> to vector<4x4096xf32>
    %61 = arith.addf %59, %60 : vector<4x4096xf32>
    %c0_31 = arith.constant 0 : index
    %c0_32 = arith.constant 0 : index
    %c0_33 = arith.constant 0 : index
    %62 = vector.load %arg10[%c0_31, %c0_32, %c0_33] : memref<1x4x4096xf32, #tpu.memory_space<vmem>>, vector<1x4x4096xf32>
    %63 = vector.shape_cast %62 : vector<1x4x4096xf32> to vector<4x4096xf32>
    %64 = vector.shape_cast %61 : vector<4x4096xf32> to vector<1x4x4096xf32>
    tpu.vector_store %arg10[%c0_31, %c0_32, %c0_33], %64 {strides = array<i32>} : memref<1x4x4096xf32, #tpu.memory_space<vmem>>, vector<1x4x4096xf32>,
    return
  }
  func.func @transform_0(%arg0: i32) -> (i32, i32, i32) {
    %c0_i32 = arith.constant 0 : i32
    %c0_i32_0 = arith.constant 0 : i32
    %c0_i32_1 = arith.constant 0 : i32
    return %arg0, %c0_i32, %c0_i32_0 : i32, i32, i32
  }
  func.func @transform_1(%arg0: i32) -> (i32, i32) {
    %c0_i32 = arith.constant 0 : i32
    %c0_i32_0 = arith.constant 0 : i32
    %c0_i32_1 = arith.constant 0 : i32
    return %c0_i32, %c0_i32_0 : i32, i32
  }
  func.func @transform_2(%arg0: i32) -> (i32, i32) {
    %c0_i32 = arith.constant 0 : i32
    %c0_i32_0 = arith.constant 0 : i32
    %c0_i32_1 = arith.constant 0 : i32
    return %c0_i32, %c0_i32_0 : i32, i32
  }
  func.func @transform_3(%arg0: i32) -> (i32, i32) {
    %c0_i32 = arith.constant 0 : i32
    %c0_i32_0 = arith.constant 0 : i32
    %c0_i32_1 = arith.constant 0 : i32
    return %c0_i32, %c0_i32_0 : i32, i32
  }
  func.func @transform_4(%arg0: i32) -> (i32, i32) {
    %c0_i32 = arith.constant 0 : i32
    %c0_i32_0 = arith.constant 0 : i32
    %c0_i32_1 = arith.constant 0 : i32
    return %c0_i32, %c0_i32_0 : i32, i32
  }
  func.func @transform_5(%arg0: i32) -> (i32, i32) {
    %c0_i32 = arith.constant 0 : i32
    %c0_i32_0 = arith.constant 0 : i32
    %c0_i32_1 = arith.constant 0 : i32
    return %c0_i32, %c0_i32_0 : i32, i32
  }
  func.func @transform_6(%arg0: i32) -> (i32, i32) {
    %c0_i32 = arith.constant 0 : i32
    %c0_i32_0 = arith.constant 0 : i32
    %c0_i32_1 = arith.constant 0 : i32
    return %c0_i32, %c0_i32_0 : i32, i32
  }
  func.func @transform_7(%arg0: i32) -> (i32, i32) {
    %c0_i32 = arith.constant 0 : i32
    %c0_i32_0 = arith.constant 0 : i32
    %c0_i32_1 = arith.constant 0 : i32
    return %c0_i32, %c0_i32_0 : i32, i32
  }
  func.func @transform_8(%arg0: i32) -> (i32, i32) {
    %c0_i32 = arith.constant 0 : i32
    %c0_i32_0 = arith.constant 0 : i32
    %c0_i32_1 = arith.constant 0 : i32
    return %c0_i32, %c0_i32_0 : i32, i32
  }
  func.func @transform_9(%arg0: i32) -> (i32, i32, i32) {
    %c0_i32 = arith.constant 0 : i32
    %c0_i32_0 = arith.constant 0 : i32
    %c0_i32_1 = arith.constant 0 : i32
    return %arg0, %c0_i32, %c0_i32_0 : i32, i32, i32
  }
}

</mosaic_0001>

<bundles_post_ra>
// kernel: tpu_custom_call.1
= control target key start
LH: loop header
LB: loop body
LE: loop exit
PB: predicated region body
PF: predicated region fallthrough
CT: control target
= control target key end

     0   :  { %14 = vsyncpa [#allocation3], 0  ;;  %s1720_s0 = inlined_call_operand.hbm [shape: f32[2,4,4096], index: 0, kind: input, shape index: {}]   ;;  %s1721_s1 = inlined_call_operand.vmem [shape: f32[4,2], index: 1, kind: input, shape index: {}]   ;;  %s1722_s2 = inlined_call_operand.vmem [shape: f32[1,2], index: 2, kind: input, shape index: {}]   ;;  %s1723_s3 = inlined_call_operand.vmem [shape: f32[4,2], index: 3, kind: input, shape index: {}]   ;;  %s1724_s4 = inlined_call_operand.vmem [shape: f32[4,1], index: 4, kind: input, shape index: {}]   ;;  %s1725_s5 = inlined_call_operand.vmem [shape: f32[4,2], index: 5, kind: input, shape index: {}]   ;;  %s1726_s6 = inlined_call_operand.vmem [shape: f32[1,2], index: 6, kind: input, shape index: {}]   ;;  %s1727_s7 = inlined_call_operand.vmem [shape: f32[4,2], index: 7, kind: input, shape index: {}]   ;;  %s1728_s8 = inlined_call_operand.vmem [shape: f32[4,1], index: 8, kind: input, shape index: {}]   ;;  %s1729_s9 = inlined_call_operand.hbm [shape: f32[2,4,4096], index: 9, kind: output, shape index: {}]  }
   0x1   :  { %16 = vsyncpa [#allocation3 + $0x1], 0 }
   0x2   :  { %17 = vsyncpa [#allocation4], 0 }
   0x3   :  { %19 = vsyncpa [#allocation4 + $0x1], 0  ;;  %s1241_s30 = smov 0   ;;  %s1243_s10 = smov 0  }
   0x4   :  { %s1245_s11 = smov 0   ;;  %s1247_s12 = smov 0  }
   0x5 LB: > { %1733 = sst [smem:[#allocation8_spill]] %s1181_s11  ;;  %s1262_s13 = sadd.s32 4294967295, %s1185_s12   ;;  %s1185_s12 = sphi %s1247_s12, %s1750_s12   ;;  %s1181_s11 = sphi %s1245_s11, %s1747_s11   ;;  %s1177_s10 = sphi %s1243_s10, %s1749_s10   ;;  %s1173_s30 = sphi %s1241_s30, %s1748_s30  }
   0x6   : > { %s1003_s14 = sadd.s32 4294967294, %s1185_s12   ;;  %s1266_s15 = sadd.s32 1, %s1185_s12  }
   0x7   : > { %s32_s16 = sadd.s32 1, %s1181_s11  ;;  %s29_s17 = ssub.s32 %s1185_s12, %s1266_s15 }
   0x8   : > { %p39_p0 = scmp.ne.s32.totalorder %s1181_s11, %s1177_s10  ;;  %p30_p1 = scmp.eq.s32.totalorder %s29_s17, 0 }
   0x9   : > { %p40_p2 = scmp.eq.s32.totalorder %s1185_s12, 0  ;;  %p45_p3 = scmp.ne.s32.totalorder %s1177_s10, %s1173_s30 }
   0xa   : > { %p46_p4 = scmp.eq.s32.totalorder %s1262_s13, 0  ;;  %p237_p7 = scmp.eq.s32.totalorder %s1262_s13, 1 }
   0xb   : > { %s1278_s18 = scalar_select %p30_p1, %s1181_s11, %s32_s16  }
   0xc   : > { %p1280_p5 = por %p40_p2, %p39_p0  ;;  %p1284_p6 = por %p46_p4, %p45_p3 }
   0xd   : > { %1734 = sst [smem:[#allocation9_spill]] %s1278_s18  ;;  %p243_p8 = scmp.eq.s32.totalorder %s1003_s14, 1 }
   0xe   : > { %s1736_s20 = scalar_select %p1284_p6, 1, 0 }
   0xf   : > { %p1031_p10 = scmp.lt.s32.totalorder %s1185_s12, 2  ;;  %p1291_p11 = por %p237_p7, %p39_p0 }
  0x10   : > { %p1295_p12 = por %p243_p8, %p45_p3  ;;  %s287_s23 = sand.u32 1, %s1181_s11  }
  0x11   : > { %s1737_s21 = scalar_select %p1291_p11, 1, 0 }
  0x12   : > { %s1738_s22 = scalar_select %p1295_p12, 1, 0 }
  0x13   : > { %s1017_s24 = sshll.u32 %s1185_s12, 11  ;;  %s1006_s25 = sshll.u32 %s287_s23, 7 }
  0x14   : > { %s1304_s28 = scalar_lea.hbm %s1720_s0, %s1017_s24  ;;  %s291_s29 = scalar_lea.vmem [#allocation2], %s1006_s25 }
  0x15   : > { %s299_s14 = sshll.u32 %s291_s29, 4  ;;  %p1308_p13 = pnand %p1031_p10, %p1280_p5  ;;  %s1312_s14 = int_to_ptr.vmem [resolvable:$true] %s299_s14 }
  0x16   : > { %s288_s17 = scalar_lea.sflag [#allocation3], %s287_s23  ;;  %s1093_s18 = scalar_lea.hbm %s1304_s28, 2048 }
  0x17   : > { %p1094_p2 = scmp.ne.s32.totalorder %s1304_s28, %s1093_s18  ;;  %p1095_p3 = pneg %p1308_p13 }
  0x18   : > { %s1098_s19 = scalar_lea.hbm %s1720_s0, 4096  ;;  %p1099_p5 = scmp.lt.s32.totalorder %s1304_s28, %s1720_s0 }
  0x19   : > { %p1096_p4 = pnand %p1095_p3, %p1094_p2  ;;  %p1100_p8 = scmp.lt.s32.totalorder %s1098_s19, %s1093_s18 }
  0x1b   : > { %p1097_p7 = pneg %p1096_p4  ;;  %p1101_p10 = por %p1100_p8, %p1099_p5 }
  0x1d   : > { %p1102_p9 = pnand %p1101_p10, %p1097_p7 }
  0x1f   : > { %1105 = shalt.err (!%p1102_p9)
}
  0x20   : > { %s1106_s23 = scalar_lea.vmem %s1312_s14, 2048  ;;  %s1187_s29 = smov [#allocation2]  }
  0x21   : > { %p1107_p0 = scmp.ne.s32.totalorder %s1312_s14, %s1106_s23  ;;  %s1111_s11 = sshll.u32 %s1187_s29, 4  ;;  %s1112_s11 = int_to_ptr.vmem [resolvable:$false] %s1111_s11 }
  0x22   : > { %s1113_s24 = scalar_lea.vmem %s1112_s11, 4096  ;;  %p1114_p4 = scmp.lt.s32.totalorder %s1312_s14, %s1112_s11 }
  0x23   : > { %p1109_p1 = pnand %p1107_p0, %p1095_p3  ;;  %p1115_p12 = scmp.lt.s32.totalorder %s1113_s24, %s1106_s23 }
  0x25   : > { %p1110_p2 = pneg %p1109_p1  ;;  %p1116_p11 = por %p1115_p12, %p1114_p4 }
  0x27   : > { %p1117_p6 = pnand %p1116_p11, %p1110_p2 }
  0x29   : > { %1120 = shalt.err (!%p1117_p6)
}
  0x2a   : > { %1026 = dma.hbm_to_vmem [thread:$0]  (!%p1308_p13), %s1304_s28, 2048, %s1312_s14, %s288_s17  }
  0x2b   : > { %p1740_p9 = scmp.lt.s32.totalorder %s1185_s12, 3  ;;  %p1741_p7 = scmp.ge.s32.totalorder %s1185_s12, 1 }
  0x2d   : > { %p305_p0 = pnand %p1741_p7, %p1740_p9 }
  0x2e   : > { %s1339_s18 = sand.u32 (!%p305_p0), 1, %s1177_s10   ;;  %p1742_p6 = scmp.ne.s32.totalorder (!%p305_p0), %s1736_s20, 0 }
  0x2f   : > { %308 = sbr.rel (%p305_p0) target bundleno = 620 (0x26c), region = 56  ;;  %s1010_s11 = sshll.u32 (!%p305_p0), %s1339_s18, 7 }
  0x30   : > { %s311_s25 = scalar_lea.sflag (!%p305_p0), [#allocation3], %s1339_s18  ;;  %s1345_s16 = scalar_lea.vmem (!%p305_p0), [#allocation2], %s1010_s11 }
  0x34   : > { %1164 = dma.done.wait (%p1742_p6), %s311_s25, 2048  }
  0x35   : > { %1166 = vsyncadd (%p1742_p6), %s311_s25, 4294965248  ;;  %vm413_vm0 = vcmask 1043456   ;;  %v1352_v0 = vld [vmem:[%s1345_s16] sm:$0xff]  ;;  %v1355_v1 = vld [vmem:[%s1345_s16 + $0x8] sm:$0xff]  ;;  %vm639_vm1 = vcmask 11264   ;;  %s1018_s19 = sshll.u32 %s1262_s13, 11 }
  0x36   : > { %v381_v2 = vcombine.high %v1352_v0, %v1352_v0  ;;  %v382_v3 = vcombine.high %v1355_v1, %v1355_v1  ;;  %v414_v4 = vsel %vm413_vm0, %v1352_v0, 0.0  ;;  %v1364_v5 = vld [vmem:[%s1345_s16 + $0x10] sm:$0xff]  ;;  %v417_v7 = vsel %vm413_vm0, %v1355_v1, 0.0  ;;  %v1373_v11 = vld [vmem:[%s1345_s16 + $0x18] sm:$0xff]  ;;  %v1381_v17 = vld [vmem:[%s1345_s16 + $0x20] sm:$0xff]  ;;  %s1655_s26 = scalar_lea.vmem [#allocation5], %s1010_s11  ;;  %s1669_s23 = scalar_lea.hbm %s1729_s9, %s1018_s19 }
  0x37   : > { %v383_v9 = vcombine.high %v1364_v5, %v1364_v5  ;;  %v421_v13 = vsel %vm413_vm0, %v1364_v5, 0.0  ;;  %v384_v15 = vcombine.high %v1373_v11, %v1373_v11  ;;  %v425_v19 = vsel %vm413_vm0, %v1373_v11, 0.0  ;;  %v1389_v23 = vld [vmem:[%s1345_s16 + $0x28] sm:$0xff]  ;;  %v1397_v29 = vld [vmem:[%s1345_s16 + $0x30] sm:$0xff]  ;;  %v1405_v35 = vld [vmem:[%s1345_s16 + $0x38] sm:$0xff]  ;;  %s933_s27 = sshll.u32 %s1655_s26, 4  ;;  %s1671_s27 = int_to_ptr.vmem [resolvable:$true] %s933_s27 }
  0x38   : > { %v415_v6 = vsel %vm413_vm0, %v381_v2, 0.0  ;;  %v419_v10 = vsel %vm413_vm0, %v382_v3, 0.0  ;;  %v385_v21 = vcombine.high %v1381_v17, %v1381_v17  ;;  %v429_v25 = vsel %vm413_vm0, %v1381_v17, 0.0  ;;  %v1413_v41 = vld [vmem:[%s1345_s16 + $0x40] sm:$0xff]  ;;  %v1421_v47 = vld [vmem:[%s1345_s16 + $0x48] sm:$0xff]  ;;  %v1429_v53 = vld [vmem:[%s1345_s16 + $0x50] sm:$0xff] }
  0x39   : > { %v416_v8 = vadd.f32 %v415_v6, %v414_v4  ;;  %v423_v16 = vsel %vm413_vm0, %v383_v9, 0.0  ;;  %v427_v22 = vsel %vm413_vm0, %v384_v15, 0.0  ;;  %v386_v27 = vcombine.high %v1389_v23, %v1389_v23  ;;  %v1437_v59 = vld [vmem:[%s1345_s16 + $0x58] sm:$0xff]  ;;  %v1445_v3 = vld [vmem:[%s1345_s16 + $0x60] sm:$0xff]  ;;  %s919_s29 = scalar_lea.sflag [#allocation4], %s1339_s18  ;;  %s1121_s24 = scalar_lea.vmem %s1671_s27, 2048 }
  0x3a   : > { %v431_v28 = vsel %vm413_vm0, %v385_v21, 0.0  ;;  %v433_v31 = vsel %vm413_vm0, %v1389_v23, 0.0  ;;  %v387_v33 = vcombine.high %v1397_v29, %v1397_v29  ;;  %v437_v37 = vsel %vm413_vm0, %v1397_v29, 0.0  ;;  %p1122_p11 = scmp.ne.s32.totalorder %s1671_s27, %s1121_s24  ;;  %p1743_p12 = scmp.ne.s32.totalorder %s1737_s21, 0 }
  0x3b   : > { %v418_v12 = vadd.f32 %v417_v7, %v416_v8  ;;  %v435_v34 = vsel %vm413_vm0, %v386_v27, 0.0  ;;  %v388_v39 = vcombine.high %v1405_v35, %v1405_v35  ;;  %v441_v43 = vsel %vm413_vm0, %v1405_v35, 0.0  ;;  %s1190_s25 = smov [#allocation5]  }
  0x3c   : > { %v439_v40 = vsel %vm413_vm0, %v387_v33, 0.0  ;;  %v389_v45 = vcombine.high %v1413_v41, %v1413_v41  ;;  %v445_v49 = vsel %vm413_vm0, %v1413_v41, 0.0  ;;  %v390_v51 = vcombine.high %v1421_v47, %v1421_v47  ;;  %p1123_p13 = pnand %p1122_p11, %p1743_p12 }
  0x3d   : > { %v420_v14 = vadd.f32 %v419_v10, %v418_v12  ;;  %v443_v46 = vsel %vm413_vm0, %v388_v39, 0.0  ;;  %v449_v55 = vsel %vm413_vm0, %v1421_v47, 0.0  ;;  %v391_v57 = vcombine.high %v1429_v53, %v1429_v53  ;;  %v1453_v10 = vld [vmem:[%s1345_s16 + $0x68] sm:$0xff] }
  0x3e   : > { %v447_v52 = vsel %vm413_vm0, %v389_v45, 0.0  ;;  %v451_v58 = vsel %vm413_vm0, %v390_v51, 0.0  ;;  %v453_v61 = vsel %vm413_vm0, %v1429_v53, 0.0  ;;  %v392_v63 = vcombine.high %v1437_v59, %v1437_v59  ;;  %v637_v45 = vld [vmem:[%s1721_s1] sm:$0xf]  ;;  %p1124_p1 = pneg %p1123_p13 }
  0x3f   : > { %v422_v18 = vadd.f32 %v421_v13, %v420_v14  ;;  %v455_v2 = vsel %vm413_vm0, %v391_v57, 0.0  ;;  %v457_v6 = vsel %vm413_vm0, %v1437_v59, 0.0  ;;  %v393_v8 = vcombine.high %v1445_v3, %v1445_v3 }
  0x40   : > { %v459_v9 = vsel %vm413_vm0, %v392_v63, 0.0  ;;  %v461_v13 = vsel %vm413_vm0, %v1445_v3, 0.0  ;;  %v394_v15 = vcombine.high %v1453_v10, %v1453_v10  ;;  %v1188_v39 = vmov 839922192  }
  0x41   : > { %v424_v20 = vadd.f32 %v423_v16, %v422_v18  ;;  %v463_v16 = vsel %vm413_vm0, %v393_v8, 0.0  ;;  %v1461_v18 = vld [vmem:[%s1345_s16 + $0x70] sm:$0xff] }
  0x42   : > { %v469_v27 = vsel %vm413_vm0, %v1461_v18, 0.0 }
  0x43   : > { %v426_v24 = vadd.f32 %v425_v19, %v424_v20  ;;  %v465_v20 = vsel %vm413_vm0, %v1453_v10, 0.0 }
  0x45   : > { %v428_v26 = vadd.f32 %v427_v22, %v426_v24  ;;  %v395_v22 = vcombine.high %v1461_v18, %v1461_v18  ;;  %v467_v24 = vsel %vm413_vm0, %v394_v15, 0.0 }
  0x47   : > { %v430_v30 = vadd.f32 %v429_v25, %v428_v26  ;;  %v1469_v25 = vld [vmem:[%s1345_s16 + $0x78] sm:$0xff]  ;;  %s1125_s16 = sshll.u32 %s1190_s25, 4  ;;  %s1126_s16 = int_to_ptr.vmem [resolvable:$false] %s1125_s16 }
  0x48   : > { %v473_v33 = vsel %vm413_vm0, %v1469_v25, 0.0  ;;  %s1127_s20 = scalar_lea.vmem %s1126_s16, 4096  ;;  %p1128_p3 = scmp.lt.s32.totalorder %s1671_s27, %s1126_s16 }
  0x49   : > { %v432_v32 = vadd.f32 %v431_v28, %v430_v30  ;;  %v396_v30 = vcombine.high %v1469_v25, %v1469_v25  ;;  %p1129_p5 = scmp.lt.s32.totalorder %s1127_s20, %s1121_s24 }
  0x4b   : > { %v434_v36 = vadd.f32 %v433_v31, %v432_v32  ;;  %v471_v31 = vsel %vm413_vm0, %v395_v22, 0.0  ;;  %p1130_p8 = por %p1129_p5, %p1128_p3 }
  0x4d   : > { %v436_v38 = vadd.f32 %v435_v34, %v434_v36  ;;  %v475_v36 = vsel %vm413_vm0, %v396_v30, 0.0  ;;  %p1131_p10 = pnand %p1130_p8, %p1124_p1 }
  0x4f   : > { %v438_v42 = vadd.f32 %v437_v37, %v436_v38 }
  0x51   : > { %v440_v44 = vadd.f32 %v439_v40, %v438_v42  ;;  %v482_v40 = vunpack.c.l.s4 %v1188_v39  ;;  %v484_v42 = vlaneseq }
  0x53   : > { %v442_v48 = vadd.f32 %v441_v43, %v440_v44  ;;  %v483_v43 = vunpack.c.0.s8 %v482_v40  ;;  %v485_v44 = vshrl.u32 %v484_v42, 7 }
  0x55   : > { %v444_v50 = vadd.f32 %v443_v46, %v442_v48  ;;  %v661_v46 = vld [vmem:[%s1725_s5] sm:$0xf] }
  0x57   : > { %v446_v54 = vadd.f32 %v445_v49, %v444_v50  ;;  %v1485_v49 = vsub.s32 %v483_v43, %v485_v44 }
  0x59   : > { %v448_v56 = vadd.f32 %v447_v52, %v446_v54 }
  0x5b   : > { %v450_v60 = vadd.f32 %v449_v55, %v448_v56 }
  0x5d   : > { %v452_v62 = vadd.f32 %v451_v58, %v450_v60 }
  0x5f   : > { %v454_v4 = vadd.f32 %v453_v61, %v452_v62 }
  0x61   : > { %v456_v7 = vadd.f32 %v455_v2, %v454_v4 }
  0x63   : > { %v458_v12 = vadd.f32 %v457_v6, %v456_v7 }
  0x65   : > { %v460_v14 = vadd.f32 %v459_v9, %v458_v12 }
  0x67   : > { %v462_v19 = vadd.f32 %v461_v13, %v460_v14  ;;  %v670_v13 = vld [vmem:[%s1726_s6] sm:$0x1] }
  0x69   : > { %v464_v21 = vadd.f32 %v463_v16, %v462_v19 }
  0x6b   : > { %v466_v26 = vadd.f32 %v465_v20, %v464_v21  ;;  %v653_v20 = vsub.s32 0, %v485_v44 }
  0x6d   : > { %v468_v28 = vadd.f32 %v467_v24, %v466_v26 }
  0x6f   : > { %v470_v32 = vadd.f32 %v469_v27, %v468_v28  ;;  %v673_v28 = vld [vmem:[%s1727_s7] sm:$0xf] }
  0x71   : > { %v472_v34 = vadd.f32 %v471_v31, %v470_v32 }
  0x73   : > { %v474_v37 = vadd.f32 %v473_v33, %v472_v34 }
  0x75   : > { %v476_v38 = vadd.f32 %v475_v36, %v474_v37 }
  0x77   : > { %477 = vadd.xlane.f32.xlu0 %v476_v38 }
 0x100   : > { %v478_v48 = vpop.xlane.xlu0 %477 }
 0x101   : > { %v479_v50 = vmul.f32 0.00024414063, %v478_v48 }
 0x103   : > { %v638_v51 = vmul.f32 %v637_v45, %v479_v50  ;;  %v662_v52 = vmul.f32 %v661_v46, %v479_v50  ;;  %v1488_v54 = vrot.slane %v479_v50, %v1485_v49 }
 0x105   : > { %v663_v55 = vsel %vm639_vm1, %v662_v52, 0.0  ;;  %v640_v56 = vsel %vm639_vm1, %v638_v51, 0.0  ;;  %v1494_v62 = vsub.f32 %v1352_v0, %v1488_v54  ;;  %v1498_v7 = vsub.f32 %v1355_v1, %v1488_v54  ;;  %v647_v0 = vld [vmem:[%s1722_s2] sm:$0x1] }
 0x106   : > { %v664_v57 = vrot.slane %v663_v55, 4  ;;  %v641_v58 = vrot.slane %v640_v56, 4  ;;  %v1510_v16 = vsub.f32 %v1364_v5, %v1488_v54  ;;  %v1516_v27 = vsub.f32 %v1373_v11, %v1488_v54  ;;  %v650_v5 = vld [vmem:[%s1723_s3] sm:$0xf] }
 0x107   : > { %v505_v8 = vmul.f32 %v1494_v62, %v1494_v62  ;;  %v506_v1 = vmul.f32 %v1498_v7, %v1498_v7  ;;  %v1531_v42 = vsub.f32 %v1381_v17, %v1488_v54  ;;  %v1541_v17 = vsub.f32 %v1389_v23, %v1488_v54 }
 0x108   : > { %v665_v60 = vadd.f32 %v664_v57, %v663_v55  ;;  %v642_v61 = vadd.f32 %v641_v58, %v640_v56  ;;  %v507_v30 = vmul.f32 %v1510_v16, %v1510_v16  ;;  %v508_v43 = vmul.f32 %v1516_v27, %v1516_v27 }
 0x109   : > { %v537_v19 = vcombine.high %v505_v8, %v505_v8  ;;  %v538_v31 = vcombine.high %v506_v1, %v506_v1  ;;  %v569_v32 = vsel %vm413_vm0, %v505_v8, 0.0  ;;  %v572_v37 = vsel %vm413_vm0, %v506_v1, 0.0 }
 0x10a   : > { %v666_v63 = vrot.slane %v665_v60, 2  ;;  %v643_v2 = vrot.slane %v642_v61, 2  ;;  %v539_v44 = vcombine.high %v507_v30, %v507_v30  ;;  %v576_v51 = vsel %vm413_vm0, %v507_v30, 0.0 }
 0x10b   : > { %v570_v33 = vsel %vm413_vm0, %v537_v19, 0.0  ;;  %v574_v45 = vsel %vm413_vm0, %v538_v31, 0.0  ;;  %v509_v55 = vmul.f32 %v1531_v42, %v1531_v42  ;;  %v540_v56 = vcombine.high %v508_v43, %v508_v43 }
 0x10c   : > { %v667_v4 = vadd.f32 %v666_v63, %v665_v60  ;;  %v644_v6 = vadd.f32 %v643_v2, %v642_v61  ;;  %v571_v11 = vadd.f32 %v570_v33, %v569_v32  ;;  %v578_v57 = vsel %vm413_vm0, %v539_v44, 0.0 }
 0x10d   : > { %v580_v60 = vsel %vm413_vm0, %v508_v43, 0.0  ;;  %v1549_v63 = vsub.f32 %v1397_v29, %v1488_v54  ;;  %v510_v2 = vmul.f32 %v1541_v17, %v1541_v17  ;;  %v582_v23 = vsel %vm413_vm0, %v540_v56, 0.0 }
 0x10e   : > { %v668_v9 = vrot.slane %v667_v4, 1  ;;  %v645_v12 = vrot.slane %v644_v6, 1  ;;  %v573_v40 = vadd.f32 %v572_v37, %v571_v11  ;;  %v584_v8 = vsel %vm413_vm0, %v509_v55, 0.0 }
 0x10f   : > { %v1565_v19 = vsub.f32 %v1413_v41, %v1488_v54 }
 0x110   : > { %v669_v14 = vadd.f32 %v668_v9, %v667_v4  ;;  %v646_v15 = vadd.f32 %v645_v12, %v644_v6  ;;  %v575_v50 = vadd.f32 %v574_v45, %v573_v40  ;;  %v541_v4 = vcombine.high %v509_v55, %v509_v55 }
 0x111   : > { %v1557_v12 = vsub.f32 %v1405_v35, %v1488_v54  ;;  %v1589_v40 = vsub.f32 %v1437_v59, %v1488_v54 }
 0x112   : > { %v671_v21 = vadd.f32 %v670_v13, %v669_v14  ;;  %v648_v22 = vadd.f32 %v647_v0, %v646_v15  ;;  %v577_v52 = vadd.f32 %v576_v51, %v575_v50  ;;  %v511_v13 = vmul.f32 %v1549_v63, %v1549_v63 }
 0x113   : > { %v542_v0 = vcombine.high %v510_v2, %v510_v2  ;;  %v586_v29 = vsel %vm413_vm0, %v541_v4, 0.0  ;;  %v588_v15 = vsel %vm413_vm0, %v510_v2, 0.0  ;;  %v1597_v50 = vsub.f32 %v1445_v3, %v1488_v54 }
 0x114   : > { %v672_v24 = vmax.f32 %v671_v21, 0.0  ;;  %v649_v26 = vmax.f32 %v648_v22, 0.0  ;;  %v579_v58 = vadd.f32 %v578_v57, %v577_v52  ;;  %v543_v21 = vcombine.high %v511_v13, %v511_v13 }
 0x115   : > { %v590_v35 = vsel %vm413_vm0, %v542_v0, 0.0  ;;  %v516_v51 = vmul.f32 %v1589_v40, %v1589_v40  ;;  %v517_v3 = vmul.f32 %v1597_v50, %v1597_v50 }
 0x116   : > { %v677_v34 = vrot.slane %v672_v24, %v653_v20  ;;  %v654_v36 = vrot.slane %v649_v26, %v653_v20  ;;  %v581_v61 = vadd.f32 %v580_v60, %v579_v58  ;;  %v512_v20 = vmul.f32 %v1557_v12, %v1557_v12 }
 0x117   : > { %v592_v24 = vsel %vm413_vm0, %v511_v13, 0.0  ;;  %v594_v41 = vsel %vm413_vm0, %v543_v21, 0.0  ;;  %v1189_v58 = vmov 0   ;;  %v1605_v60 = vsub.f32 %v1453_v10, %v1488_v54 }
 0x118   : > { %v678_v38 = vmul.f32 %v677_v34, %v673_v28  ;;  %v655_v39 = vmul.f32 %v654_v36, %v650_v5  ;;  %v583_v6 = vadd.f32 %v582_v23, %v581_v61  ;;  %v1573_v28 = vsub.f32 %v1421_v47, %v1488_v54  ;;  %1068 = vset.pattern.permute.xlu1 %v1189_v58 }
 0x119   : > { %v513_v5 = vmul.f32 %v1565_v19, %v1565_v19  ;;  %v544_v30 = vcombine.high %v512_v20, %v512_v20  ;;  %v596_v32 = vsel %vm413_vm0, %v512_v20, 0.0  ;;  %v1581_v34 = vsub.f32 %v1429_v53, %v1488_v54  ;;  %1067 = vset.pattern.permute.xlu0 %v1189_v58 }
 0x11a   : > { %v679_v46 = vsel %vm639_vm1, %v678_v38, 0.0  ;;  %v656_v48 = vsel %vm639_vm1, %v655_v39, 0.0  ;;  %v585_v9 = vadd.f32 %v584_v8, %v583_v6  ;;  %v514_v36 = vmul.f32 %v1573_v28, %v1573_v28 }
 0x11b   : > { %680 = vadd.xlane.f32.xlu1 %v679_v46  ;;  %657 = vadd.xlane.f32.xlu0 %v656_v48  ;;  %v545_v11 = vcombine.high %v513_v5, %v513_v5  ;;  %v598_v47 = vsel %vm413_vm0, %v544_v30, 0.0  ;;  %v600_v38 = vsel %vm413_vm0, %v513_v5, 0.0  ;;  %v515_v43 = vmul.f32 %v1581_v34, %v1581_v34 }
 0x11c   : > { %v587_v14 = vadd.f32 %v586_v29, %v585_v9  ;;  %v546_v44 = vcombine.high %v514_v36, %v514_v36  ;;  %v604_v46 = vsel %vm413_vm0, %v514_v36, 0.0  ;;  %v548_v61 = vcombine.high %v516_v51, %v516_v51 }
 0x11d   : > { %v602_v53 = vsel %vm413_vm0, %v545_v11, 0.0  ;;  %v547_v52 = vcombine.high %v515_v43, %v515_v43  ;;  %v608_v56 = vsel %vm413_vm0, %v515_v43, 0.0  ;;  %v612_v23 = vsel %vm413_vm0, %v516_v51, 0.0 }
 0x11e   : > { %v589_v1 = vadd.f32 %v588_v15, %v587_v14  ;;  %v606_v59 = vsel %vm413_vm0, %v546_v44, 0.0  ;;  %v1613_v8 = vsub.f32 %v1461_v18, %v1488_v54  ;;  %v518_v9 = vmul.f32 %v1605_v60, %v1605_v60 }
 0x11f   : > { %v610_v2 = vsel %vm413_vm0, %v547_v52, 0.0  ;;  %v549_v13 = vcombine.high %v517_v3, %v517_v3  ;;  %v614_v10 = vsel %vm413_vm0, %v548_v61, 0.0  ;;  %v616_v29 = vsel %vm413_vm0, %v517_v3, 0.0 }
 0x120   : > { %v591_v22 = vadd.f32 %v590_v35, %v589_v1  ;;  %v504_v15 = vsub.f32 %v1469_v25, %v1488_v54  ;;  %v519_v1 = vmul.f32 %v1613_v8, %v1613_v8  ;;  %v550_v20 = vcombine.high %v518_v9, %v518_v9 }
 0x121   : > { %v618_v18 = vsel %vm413_vm0, %v549_v13, 0.0  ;;  %v620_v35 = vsel %vm413_vm0, %v518_v9, 0.0 }
 0x122   : > { %v593_v26 = vadd.f32 %v592_v24, %v591_v22  ;;  %v520_v24 = vmul.f32 %v504_v15, %v504_v15  ;;  %v622_v5 = vsel %vm413_vm0, %v550_v20, 0.0 }
 0x124   : > { %v595_v31 = vadd.f32 %v594_v41, %v593_v26  ;;  %v551_v26 = vcombine.high %v519_v1, %v519_v1  ;;  %v624_v41 = vsel %vm413_vm0, %v519_v1, 0.0 }
 0x126   : > { %v597_v33 = vadd.f32 %v596_v32, %v595_v31  ;;  %v552_v32 = vcombine.high %v520_v24, %v520_v24  ;;  %v626_v25 = vsel %vm413_vm0, %v551_v26, 0.0 }
 0x128   : > { %v599_v37 = vadd.f32 %v598_v47, %v597_v33  ;;  %v628_v33 = vsel %vm413_vm0, %v520_v24, 0.0  ;;  %v630_v11 = vsel %vm413_vm0, %v552_v32, 0.0 }
 0x12a   : > { %v601_v39 = vadd.f32 %v600_v38, %v599_v37  ;;  %v682_v37 = vld [vmem:[%s1728_s8] sm:$0xf] }
 0x12b   : > { %v659_v38 = vld [vmem:[%s1724_s4] sm:$0xf] }
 0x12c   : > { %v603_v45 = vadd.f32 %v602_v53, %v601_v39 }
 0x12e   : > { %v605_v48 = vadd.f32 %v604_v46, %v603_v45 }
 0x130   : > { %v607_v55 = vadd.f32 %v606_v59, %v605_v48 }
 0x132   : > { %v609_v57 = vadd.f32 %v608_v56, %v607_v55 }
 0x134   : > { %v611_v4 = vadd.f32 %v610_v2, %v609_v57 }
 0x136   : > { %v613_v6 = vadd.f32 %v612_v23, %v611_v4 }
 0x138   : > { %v615_v0 = vadd.f32 %v614_v10, %v613_v6 }
 0x13a   : > { %v617_v14 = vadd.f32 %v616_v29, %v615_v0 }
 0x13c   : > { %v619_v21 = vadd.f32 %v618_v18, %v617_v14 }
 0x13e   : > { %v621_v22 = vadd.f32 %v620_v35, %v619_v21 }
 0x140   : > { %v623_v30 = vadd.f32 %v622_v5, %v621_v22 }
 0x142   : > { %v625_v31 = vadd.f32 %v624_v41, %v623_v30 }
 0x144   : > { %v627_v54 = vadd.f32 %v626_v25, %v625_v31 }
 0x146   : > { %v629_v36 = vadd.f32 %v628_v33, %v627_v54 }
 0x148   : > { %v631_v47 = vadd.f32 %v630_v11, %v629_v36 }
 0x14a   : > { %632 = vadd.xlane.f32.xlu1 %v631_v47 }
 0x1a4   : > { %v681_v39 = vpop.xlane.xlu1 %680  ;;  %v658_v43 = vpop.xlane.xlu0 %657 }
 0x1a5   : > { %v683_v44 = vadd.f32 %v682_v37, %v681_v39  ;;  %v660_v53 = vadd.f32 %v659_v38, %v658_v43 }
 0x1a7   : > { %1085 = vtanh.f32 %v683_v44  ;;  %v684_v45 = vsub.f32 0.0, %v660_v53 }
 0x1a9   : > { %v685_v46 = vmul.f32 1.442695, %v684_v45 }
 0x1ab   : > { %1087 = vpow2.f32 %v685_v46 }
 0x1b4   : > { %v1086_v48 = vpop.eup %1085 }
 0x1b5   : > { %803 = vperm.xlu1 %1068, %v1086_v48  }
 0x1b8   : > { %v1088_v51 = vpop.eup %1087 }
 0x1b9   : > { %v687_v52 = vadd.f32 1.0, %v1088_v51 }
 0x1bb   : > { %1089 = vrcp.f32 %v687_v52 }
 0x1c8   : > { %v1090_v59 = vpop.eup %1089 }
 0x1c9   : > { %718 = vperm.xlu0 %1067, %v1090_v59  }
 0x1d3   : > { %v633_v55 = vpop.xlane.xlu1 %632 }
 0x1d4   : > { %v634_v56 = vmul.f32 0.00024414063, %v633_v55 }
 0x1d6   : > { %v635_v57 = vadd.f32 1e-05, %v634_v56 }
 0x1d8   : > { %1091 = vrsqrt.f32 %v635_v57 }
 0x1e5   : > { %v1092_v58 = vpop.eup %1091 }
 0x1e6   : > { %v698_v3 = vrot.slane %v1092_v58, %v1485_v49 }
 0x1e8   : > { %v700_v61 = vmul.f32 %v698_v3, %v1494_v62  ;;  %v701_v2 = vmul.f32 %v698_v3, %v1498_v7  ;;  %v702_v4 = vmul.f32 %v698_v3, %v1510_v16  ;;  %v703_v23 = vmul.f32 %v698_v3, %v1516_v27 }
 0x1e9   : > { %v704_v6 = vmul.f32 %v698_v3, %v1531_v42  ;;  %v705_v9 = vmul.f32 %v698_v3, %v1541_v17  ;;  %v706_v13 = vmul.f32 %v698_v3, %v1549_v63  ;;  %v707_v10 = vmul.f32 %v698_v3, %v1557_v12 }
 0x1ea   : > { %v708_v0 = vmul.f32 %v698_v3, %v1565_v19  ;;  %v709_v49 = vmul.f32 %v698_v3, %v1573_v28  ;;  %v710_v62 = vmul.f32 %v698_v3, %v1581_v34  ;;  %v711_v7 = vmul.f32 %v698_v3, %v1589_v40 }
 0x1eb   : > { %v712_v16 = vmul.f32 %v698_v3, %v1597_v50  ;;  %v713_v27 = vmul.f32 %v698_v3, %v1605_v60  ;;  %v714_v42 = vmul.f32 %v698_v3, %v1613_v8  ;;  %v715_v29 = vmul.f32 %v698_v3, %v504_v15 }
 0x1ec   : > { %v737_v17 = vcombine.high %v700_v61, %v700_v61  ;;  %v738_v14 = vcombine.high %v701_v2, %v701_v2  ;;  %v739_v63 = vcombine.high %v702_v4, %v702_v4  ;;  %v740_v1 = vcombine.high %v703_v23, %v703_v23 }
 0x1ed   : > { %v741_v12 = vcombine.high %v704_v6, %v704_v6  ;;  %v742_v20 = vcombine.high %v705_v9, %v705_v9  ;;  %v743_v19 = vcombine.high %v706_v13, %v706_v13  ;;  %v744_v18 = vcombine.high %v707_v10, %v707_v10 }
 0x1ee   : > { %v745_v28 = vcombine.high %v708_v0, %v708_v0  ;;  %v746_v21 = vcombine.high %v709_v49, %v709_v49  ;;  %v747_v34 = vcombine.high %v710_v62, %v710_v62  ;;  %v748_v35 = vcombine.high %v711_v7, %v711_v7 }
 0x1ef   : > { %v749_v22 = vcombine.high %v712_v16, %v712_v16  ;;  %v750_v50 = vcombine.high %v713_v27, %v713_v27  ;;  %v751_v24 = vcombine.high %v714_v42, %v714_v42  ;;  %v752_v60 = vcombine.high %v715_v29, %v715_v29 }
 0x230   : > { %v804_v57 = vpop.permute.xlu1 %803 }
 0x244   : > { %v719_v40 = vpop.permute.xlu0 %718 }
 0x245   : > { %v769_v26 = vmul.f32 %v719_v40, %v700_v61  ;;  %v770_v8 = vmul.f32 %v737_v17, %v719_v40  ;;  %v771_v15 = vmul.f32 %v719_v40, %v701_v2  ;;  %v772_v5 = vmul.f32 %v738_v14, %v719_v40 }
 0x246   : > { %v773_v30 = vmul.f32 %v719_v40, %v702_v4  ;;  %v774_v41 = vmul.f32 %v739_v63, %v719_v40  ;;  %v775_v31 = vmul.f32 %v719_v40, %v703_v23  ;;  %v776_v32 = vmul.f32 %v740_v1, %v719_v40 }
 0x247   : > { %v777_v25 = vmul.f32 %v719_v40, %v704_v6  ;;  %v778_v54 = vmul.f32 %v741_v12, %v719_v40  ;;  %v779_v33 = vmul.f32 %v719_v40, %v705_v9  ;;  %v780_v36 = vmul.f32 %v742_v20, %v719_v40 }
 0x248   : > { %v781_v11 = vmul.f32 %v719_v40, %v706_v13  ;;  %v782_v47 = vmul.f32 %v743_v19, %v719_v40  ;;  %v783_v37 = vmul.f32 %v719_v40, %v707_v10  ;;  %v784_v38 = vmul.f32 %v744_v18, %v719_v40 }
 0x249   : > { %v785_v39 = vmul.f32 %v719_v40, %v708_v0  ;;  %v786_v43 = vmul.f32 %v745_v28, %v719_v40  ;;  %v787_v44 = vmul.f32 %v719_v40, %v709_v49  ;;  %v788_v53 = vmul.f32 %v746_v21, %v719_v40 }
 0x24a   : > { %v789_v45 = vmul.f32 %v719_v40, %v710_v62  ;;  %v790_v46 = vmul.f32 %v747_v34, %v719_v40  ;;  %v791_v48 = vmul.f32 %v719_v40, %v711_v7  ;;  %v792_v51 = vmul.f32 %v748_v35, %v719_v40 }
 0x24b   : > { %v793_v52 = vmul.f32 %v719_v40, %v712_v16  ;;  %v794_v59 = vmul.f32 %v749_v22, %v719_v40  ;;  %v795_v55 = vmul.f32 %v719_v40, %v713_v27  ;;  %v796_v56 = vmul.f32 %v750_v50, %v719_v40 }
 0x24c   : > { %v797_v58 = vmul.f32 %v719_v40, %v714_v42  ;;  %v798_v3 = vmul.f32 %v751_v24, %v719_v40  ;;  %v799_v61 = vmul.f32 %v719_v40, %v715_v29  ;;  %v800_v2 = vmul.f32 %v752_v60, %v719_v40 }
 0x24d   : > { %v806_v4 = vadd.f32 %v804_v57, %v769_v26  ;;  %v807_v23 = vadd.f32 %v804_v57, %v770_v8  ;;  %v808_v6 = vadd.f32 %v804_v57, %v771_v15  ;;  %v809_v9 = vadd.f32 %v804_v57, %v772_v5 }
 0x24e   : > { %v810_v13 = vadd.f32 %v804_v57, %v773_v30  ;;  %v811_v10 = vadd.f32 %v804_v57, %v774_v41  ;;  %v812_v0 = vadd.f32 %v804_v57, %v775_v31  ;;  %v813_v49 = vadd.f32 %v804_v57, %v776_v32 }
 0x24f   : > { %v814_v62 = vadd.f32 %v804_v57, %v777_v25  ;;  %v815_v7 = vadd.f32 %v804_v57, %v778_v54  ;;  %v816_v17 = vadd.f32 %v804_v57, %v779_v33  ;;  %v817_v16 = vadd.f32 %v804_v57, %v780_v36 }
 0x250   : > { %v818_v14 = vadd.f32 %v804_v57, %v781_v11  ;;  %v819_v27 = vadd.f32 %v804_v57, %v782_v47  ;;  %v820_v63 = vadd.f32 %v804_v57, %v783_v37  ;;  %v821_v1 = vadd.f32 %v804_v57, %v784_v38 }
 0x251   : > { %v822_v42 = vadd.f32 %v804_v57, %v785_v39  ;;  %v823_v12 = vadd.f32 %v804_v57, %v786_v43  ;;  %v824_v29 = vadd.f32 %v804_v57, %v787_v44  ;;  %v825_v20 = vadd.f32 %v804_v57, %v788_v53 }
 0x252   : > { %v826_v19 = vadd.f32 %v804_v57, %v789_v45  ;;  %v827_v18 = vadd.f32 %v804_v57, %v790_v46  ;;  %v828_v28 = vadd.f32 %v804_v57, %v791_v48  ;;  %v829_v21 = vadd.f32 %v804_v57, %v792_v51 }
 0x253   : > { %v830_v34 = vadd.f32 %v804_v57, %v793_v52  ;;  %v831_v35 = vadd.f32 %v804_v57, %v794_v59  ;;  %v832_v40 = vadd.f32 %v804_v57, %v795_v55  ;;  %v833_v22 = vadd.f32 %v804_v57, %v796_v56 }
 0x254   : > { %v834_v50 = vadd.f32 %v804_v57, %v797_v58  ;;  %v835_v24 = vadd.f32 %v804_v57, %v798_v3  ;;  %v836_v60 = vadd.f32 %v804_v57, %v799_v61  ;;  %v837_v26 = vadd.f32 %v804_v57, %v800_v2 }
 0x255   : > { %v870_v8 = vcombine.low %v806_v4, %v807_v23  ;;  %v871_v15 = vcombine.low %v808_v6, %v809_v9  ;;  %v872_v5 = vcombine.low %v810_v13, %v811_v10  ;;  %v873_v30 = vcombine.low %v812_v0, %v813_v49 }
 0x256   : > { %v874_v41 = vcombine.low %v814_v62, %v815_v7  ;;  %v875_v31 = vcombine.low %v816_v17, %v817_v16  ;;  %v876_v32 = vcombine.low %v818_v14, %v819_v27  ;;  %v877_v25 = vcombine.low %v820_v63, %v821_v1 }
 0x257   : > { %v878_v54 = vcombine.low %v822_v42, %v823_v12  ;;  %v879_v33 = vcombine.low %v824_v29, %v825_v20  ;;  %v880_v36 = vcombine.low %v826_v19, %v827_v18  ;;  %v881_v11 = vcombine.low %v828_v28, %v829_v21  ;;  %902 = vst [vmem:[%s1655_s26] sm:$0xff] %v870_v8 }
 0x258   : > { %903 = vst [vmem:[%s1655_s26 + $0x8] sm:$0xff] %v871_v15  ;;  %904 = vst [vmem:[%s1655_s26 + $0x10] sm:$0xff] %v872_v5  ;;  %v882_v47 = vcombine.low %v830_v34, %v831_v35  ;;  %v883_v37 = vcombine.low %v832_v40, %v833_v22  ;;  %v884_v38 = vcombine.low %v834_v50, %v835_v24 }
 0x259   : > { %905 = vst [vmem:[%s1655_s26 + $0x18] sm:$0xff] %v873_v30  ;;  %v885_v39 = vcombine.low %v836_v60, %v837_v26  ;;  %906 = vst [vmem:[%s1655_s26 + $0x20] sm:$0xff] %v874_v41 }
 0x25a   : > { %907 = vst [vmem:[%s1655_s26 + $0x28] sm:$0xff] %v875_v31  ;;  %908 = vst [vmem:[%s1655_s26 + $0x30] sm:$0xff] %v876_v32 }
 0x25b   : > { %909 = vst [vmem:[%s1655_s26 + $0x38] sm:$0xff] %v877_v25  ;;  %910 = vst [vmem:[%s1655_s26 + $0x40] sm:$0xff] %v878_v54 }
 0x25c   : > { %911 = vst [vmem:[%s1655_s26 + $0x48] sm:$0xff] %v879_v33  ;;  %912 = vst [vmem:[%s1655_s26 + $0x50] sm:$0xff] %v880_v36 }
 0x25d   : > { %913 = vst [vmem:[%s1655_s26 + $0x58] sm:$0xff] %v881_v11  ;;  %914 = vst [vmem:[%s1655_s26 + $0x60] sm:$0xff] %v882_v47 }
 0x25e   : > { %915 = vst [vmem:[%s1655_s26 + $0x68] sm:$0xff] %v883_v37  ;;  %916 = vst [vmem:[%s1655_s26 + $0x70] sm:$0xff] %v884_v38 }
 0x25f   : > { %917 = vst [vmem:[%s1655_s26 + $0x78] sm:$0xff] %v885_v39 }
 0x260   : > { %1134 = shalt.err (!%p1131_p10)
}
 0x261   : > { %s1135_s28 = scalar_lea.hbm %s1669_s23, 2048  ;;  %s1139_s17 = scalar_lea.hbm %s1729_s9, 4096 }
 0x262   : > { %p1136_p2 = scmp.ne.s32.totalorder %s1669_s23, %s1135_s28  ;;  %p1140_p7 = scmp.lt.s32.totalorder %s1669_s23, %s1729_s9 }
 0x263   : > { %p1141_p0 = scmp.lt.s32.totalorder %s1139_s17, %s1135_s28 }
 0x264   : > { %p1137_p4 = pnand %p1136_p2, %p1743_p12 }
 0x265   : > { %p1142_p6 = por %p1141_p0, %p1140_p7 }
 0x266   : > { %p1138_p9 = pneg %p1137_p4 }
 0x268   : > { %p1143_p11 = pnand %p1142_p6, %p1138_p9 }
 0x26a   : > { %1146 = shalt.err (!%p1143_p11)
}
 0x26b   : > { %1021 = dma.vmem_to_hbm [thread:$0]  (%p1743_p12), %s1671_s27, 2048, %s1669_s23, %s919_s29  }
 0x26c PF: > { %s945_s13 = sand.u32 1, %s1173_s30   ;;  %p1744_p13 = scmp.ne.s32.totalorder %s1738_s22, 0 }
 0x26d   : > { %p1745_p1 = scmp.ge.s32.totalorder %s1185_s12, 2  ;;  %s946_s11 = scalar_lea.sflag [#allocation4], %s945_s13 }
 0x26f   : > { %p1028_p3 = pnand %p1745_p1, %p1744_p13 }
 0x271   : > { %p1029_p5 = pneg %p1028_p3 }
 0x273   : > { %1168 = dma.done.wait (%p1029_p5), %s946_s11, 2048  }
 0x274   : > { %1170 = vsyncadd (%p1029_p5), %s946_s11, 4294965248  ;;  %s1746_s24 = sld [smem:[#allocation8_spill]]  ;;  %p22_p8 = scmp.ge.s32.totalorder %s1266_s15, 4  }
 0x275   : > { %s1747_s11 = sld [smem:[#allocation9_spill]]  ;;  %s1748_s30 = smov %s1177_s10 }
 0x276   : > { %s1750_s12 = smov %s1266_s15  ;;  %24 = sbr.rel (!%p22_p8) target bundleno = 5 (0x5), region = 101 }
 0x27a   : > { %s1749_s10 = smov %s1746_s24 }
 0x27b   :  { %951 = vsyncpa [#allocation3], 1 }
 0x27c   :  { %953 = vsyncpa [#allocation3 + $0x1], 1 }
 0x27d   :  { %954 = vsyncpa [#allocation4], 1 }
 0x27e   :  { %956 = vsyncpa [#allocation4 + $0x1], 1 }

</bundles_post_ra>
